<compile_context>
chip_gen: v7x
topology: tpu7x:2x2x1
jax: 0.10.0
libtpu: 0.0.40
codegen_flags: <defaults>
</compile_context>

<pallas_src>
import functools

import jax
import jax.numpy as jnp
from jax import lax
from jax.experimental import pallas as pl
from jax.experimental.pallas import tpu as pltpu


def _spatial_transformer_kernel(src_ref, locs_ref, out_ref, *, C, H, W):
    """src_ref: (1, C*H, W); locs_ref: (1, 2, tq) f32 sample coords; out_ref: (1, C, tq)."""
    f32 = jnp.float32

    locs = locs_ref[0]                                     # (2, tq): grid + flow
    py = locs[0:1, :]                                      # (1, tq) sample row coordinate
    px = locs[1:2, :]                                      # (1, tq) sample col coordinate

    y0f = jnp.floor(py)
    x0f = jnp.floor(px)
    ty = py - y0f                                          # (1, tq) fractional weights
    tx = px - x0f
    y0 = y0f.astype(jnp.int32)
    x0 = x0f.astype(jnp.int32)

    tq = locs.shape[1]
    hh = lax.broadcasted_iota(jnp.int32, (H, tq), 0)
    ww = lax.broadcasted_iota(jnp.int32, (W, tq), 0)
    # Separable one-hot interpolation matrices; out-of-range corners match nothing -> zeros
    # (== grid_sample's default zero padding).
    ry = jnp.where(hh == y0, 1.0 - ty, jnp.where(hh == y0 + 1, ty, 0.0))   # (H, tq) f32
    cx = jnp.where(ww == x0, 1.0 - tx, jnp.where(ww == x0 + 1, tx, 0.0))   # (W, tq) f32

    # ---- stage 1: contract over W on the MXU ----
    src2d = src_ref[0]                                     # (C*H, W)
    if src2d.dtype == jnp.bfloat16:
        tmp = jnp.dot(src2d, cx.astype(jnp.bfloat16), preferred_element_type=f32)
    else:
        tmp = jnp.dot(src2d.astype(f32), cx, preferred_element_type=f32)  # (C*H, tq)

    # ---- stage 2: contract over H per channel (VPU mul + sublane reduce); C small & static ----
    rows = []
    for c in range(C):                                     # unrolled, static slices
        blk = tmp[c * H:(c + 1) * H, :]                    # (H, tq)
        rows.append(jnp.sum(blk * ry, axis=0, keepdims=True))   # (1, tq)
    out_ref[0] = jnp.concatenate(rows, axis=0).astype(out_ref.dtype)      # (C, tq)


def _pick_tile(HW):
    # Lane-dense output tile: multiple of 128, capped at 512 to bound f32 intermediates.
    for t in (512, 256, 128):
        if HW % t == 0:
            return t
    return HW                                              # full-extent block (always legal)


def spatial_transformer(src, flow):
    """src: [B, C, H, W], flow: [B, 2, H, W] -> [B, C, H, W]"""
    B, C, H, W = src.shape
    assert flow.shape == (B, 2, H, W)
    HW = H * W
    tq = _pick_tile(HW)
    n_tiles = HW // tq

    # Identity grid (the module's registered buffer) added to the flow, exactly like the module.
    gy, gx = jnp.meshgrid(jnp.arange(H, dtype=jnp.float32),
                          jnp.arange(W, dtype=jnp.float32), indexing="ij")
    grid = jnp.stack([gy, gx])[None]                            # (1, 2, H, W)
    locs = (grid + flow.astype(jnp.float32)).reshape(B, 2, HW)  # f32 sample coordinates

    src_f = src.reshape(B, C * H, W)                            # contiguous, free reshape

    kernel = functools.partial(_spatial_transformer_kernel, C=C, H=H, W=W)

    # Rough VMEM budget: double-buffered I/O blocks + f32 intermediates, 2x margin,
    # clamped to stay well inside every generation's physical VMEM (incl. v7x 64 MiB).
    isz = jnp.dtype(src.dtype).itemsize
    blocks = 2 * (C * H * W * isz + 2 * tq * 4 + C * tq * isz)
    scratch = 4 * tq * (2 * H + 2 * W + C * H + 16)
    vmem_limit = int(min(max(2 * (blocks + scratch), 16 << 20), 48 << 20))

    out = pl.pallas_call(
        kernel,
        out_shape=jax.ShapeDtypeStruct((B, C, HW), src.dtype),
        grid_spec=pltpu.PrefetchScalarGridSpec(
            num_scalar_prefetch=0,
            grid=(B, n_tiles),
            in_specs=[
                pl.BlockSpec((1, C * H, W), lambda b, t: (b, 0, 0)),   # full image; one DMA / batch
                pl.BlockSpec((1, 2, tq), lambda b, t: (b, 0, t)),      # coords for this tile
            ],
            out_specs=pl.BlockSpec((1, C, tq), lambda b, t: (b, 0, t)),
        ),
        compiler_params=pltpu.CompilerParams(
            dimension_semantics=("parallel", "parallel"),   # no reduction axis; megacore-friendly
            vmem_limit_bytes=vmem_limit,
        ),
    )(src_f, locs)
    return out.reshape(B, C, H, W)


def _reference(src, flow):
    """Pure-JAX replica of the PyTorch forward (2-D, bilinear, align_corners=True, zero pad)."""
    B, C, H, W = src.shape
    gy, gx = jnp.meshgrid(jnp.arange(H, dtype=jnp.float32),
                          jnp.arange(W, dtype=jnp.float32), indexing="ij")
    # literal transcription of the module: normalize then grid_sample's de-normalize
    py = gy[None] + flow[:, 0]
    px = gx[None] + flow[:, 1]
    py = (2.0 * (py / (H - 1) - 0.5) + 1.0) * 0.5 * (H - 1)
    px = (2.0 * (px / (W - 1) - 0.5) + 1.0) * 0.5 * (W - 1)
    y0 = jnp.floor(py)
    x0 = jnp.floor(px)
    ty = py - y0
    tx = px - x0
    y0i = y0.astype(jnp.int32)
    x0i = x0.astype(jnp.int32)
    srcf = src.reshape(B, C, H * W)
    outf = jnp.zeros((B, C, H * W), jnp.float32)
    for dy, dx, w in [(0, 0, (1 - ty) * (1 - tx)), (0, 1, (1 - ty) * tx),
                      (1, 0, ty * (1 - tx)), (1, 1, ty * tx)]:
        yy = y0i + dy
        xx = x0i + dx
        valid = (yy >= 0) & (yy <= H - 1) & (xx >= 0) & (xx <= W - 1)
        idx = (jnp.clip(yy, 0, H - 1) * W + jnp.clip(xx, 0, W - 1)).reshape(B, H * W)
        vals = jax.vmap(lambda s, i: s[:, i])(srcf, idx)          # (B, C, HW)
        wv = jnp.where(valid, w, 0.0).reshape(B, 1, H * W)
        outf = outf + wv * vals
    return outf.reshape(B, C, H, W)


if __name__ == "__main__":
    key = jax.random.PRNGKey(0)
    k1, k2 = jax.random.split(key)
    B, C, H, W = 2, 4, 16, 16
    src = jax.random.normal(k1, (B, C, H, W), dtype=jnp.float32)
    flow = 3.0 * jax.random.normal(k2, (B, 2, H, W), dtype=jnp.float32)

    out = spatial_transformer(src, flow)
    jax.block_until_ready(out)

    ref = _reference(src, flow)
    assert out.shape == (B, C, H, W)
    assert float(jnp.max(jnp.abs(out - ref))) < 1e-3, "mismatch vs reference"
    print("KERNEL_OK")
</pallas_src>

<mosaic_0001>
module attributes {stable_mosaic.version = 11 : i64} {
  func.func @_spatial_transformer_kernel(%arg0: i32, %arg1: i32, %arg2: memref<1x64x16xf32, #tpu.memory_space<vmem>>, %arg3: memref<1x2x256xf32, #tpu.memory_space<vmem>>, %arg4: memref<1x4x256xf32, #tpu.memory_space<vmem>>) attributes {dimension_semantics = [#tpu.dimension_semantics<parallel>, #tpu.dimension_semantics<parallel>], iteration_bounds = array<i64: 2, 1>, scalar_prefetch = 0 : i64, scratch_operands = 0 : i64, tpu.core_type = #tpu.core_type<tc>, window_params = [{transform_indices = @transform_0, window_bounds = array<i64: 1, 64, 16>}, {transform_indices = @transform_1, window_bounds = array<i64: 1, 2, 256>}, {transform_indices = @transform_2, window_bounds = array<i64: 1, 4, 256>}]} {
    %c0 = arith.constant 0 : index
    %c0_0 = arith.constant 0 : index
    %c0_1 = arith.constant 0 : index
    %0 = vector.load %arg3[%c0, %c0_0, %c0_1] : memref<1x2x256xf32, #tpu.memory_space<vmem>>, vector<1x2x256xf32>
    %1 = vector.shape_cast %0 : vector<1x2x256xf32> to vector<2x256xf32>
    %2 = vector.extract_strided_slice %1 {offsets = [0, 0], sizes = [1, 256], strides = [1, 1]} : vector<2x256xf32> to vector<1x256xf32>
    %3 = vector.extract_strided_slice %1 {offsets = [1, 0], sizes = [1, 256], strides = [1, 1]} : vector<2x256xf32> to vector<1x256xf32>
    %4 = math.floor %2 : vector<1x256xf32>
    %5 = math.floor %3 : vector<1x256xf32>
    %6 = arith.subf %2, %4 : vector<1x256xf32>
    %7 = arith.subf %3, %5 : vector<1x256xf32>
    %8 = arith.fptosi %4 : vector<1x256xf32> to vector<1x256xi32>
    %9 = arith.fptosi %5 : vector<1x256xf32> to vector<1x256xi32>
    %10 = tpu.iota {dimensions = array<i32: 0>} : vector<16x256xi32>
    %11 = tpu.iota {dimensions = array<i32: 0>} : vector<16x256xi32>
    %12 = vector.broadcast %8 : vector<1x256xi32> to vector<16x256xi32>
    %13 = arith.cmpi eq, %10, %12 : vector<16x256xi32>
    %cst = arith.constant 1.000000e+00 : f32
    %14 = vector.broadcast %cst : f32 to vector<1x256xf32>
    %15 = arith.subf %14, %6 : vector<1x256xf32>
    %c1_i32 = arith.constant 1 : i32
    %16 = vector.broadcast %c1_i32 : i32 to vector<1x256xi32>
    %17 = arith.addi %8, %16 : vector<1x256xi32>
    %18 = vector.broadcast %17 : vector<1x256xi32> to vector<16x256xi32>
    %19 = arith.cmpi eq, %10, %18 : vector<16x256xi32>
    %cst_2 = arith.constant 0.000000e+00 : f32
    %20 = vector.shape_cast %6 : vector<1x256xf32> to vector<1x256xf32>
    %21 = vector.broadcast %20 : vector<1x256xf32> to vector<16x256xf32>
    %22 = vector.broadcast %cst_2 : f32 to vector<16x256xf32>
    %23 = arith.select %19, %21, %22 : vector<16x256xi1>, vector<16x256xf32>
    %24 = vector.shape_cast %15 : vector<1x256xf32> to vector<1x256xf32>
    %25 = vector.broadcast %24 : vector<1x256xf32> to vector<16x256xf32>
    %26 = arith.select %13, %25, %23 : vector<16x256xi1>, vector<16x256xf32>
    %27 = vector.broadcast %9 : vector<1x256xi32> to vector<16x256xi32>
    %28 = arith.cmpi eq, %11, %27 : vector<16x256xi32>
    %cst_3 = arith.constant 1.000000e+00 : f32
    %29 = vector.broadcast %cst_3 : f32 to vector<1x256xf32>
    %30 = arith.subf %29, %7 : vector<1x256xf32>
    %c1_i32_4 = arith.constant 1 : i32
    %31 = vector.broadcast %c1_i32_4 : i32 to vector<1x256xi32>
    %32 = arith.addi %9, %31 : vector<1x256xi32>
    %33 = vector.broadcast %32 : vector<1x256xi32> to vector<16x256xi32>
    %34 = arith.cmpi eq, %11, %33 : vector<16x256xi32>
    %cst_5 = arith.constant 0.000000e+00 : f32
    %35 = vector.shape_cast %7 : vector<1x256xf32> to vector<1x256xf32>
    %36 = vector.broadcast %35 : vector<1x256xf32> to vector<16x256xf32>
    %37 = vector.broadcast %cst_5 : f32 to vector<16x256xf32>
    %38 = arith.select %34, %36, %37 : vector<16x256xi1>, vector<16x256xf32>
    %39 = vector.shape_cast %30 : vector<1x256xf32> to vector<1x256xf32>
    %40 = vector.broadcast %39 : vector<1x256xf32> to vector<16x256xf32>
    %41 = arith.select %28, %40, %38 : vector<16x256xi1>, vector<16x256xf32>
    %c0_6 = arith.constant 0 : index
    %c0_7 = arith.constant 0 : index
    %c0_8 = arith.constant 0 : index
    %42 = vector.load %arg2[%c0_6, %c0_7, %c0_8] : memref<1x64x16xf32, #tpu.memory_space<vmem>>, vector<1x64x16xf32>
    %43 = vector.shape_cast %42 : vector<1x64x16xf32> to vector<64x16xf32>
    %cst_9 = arith.constant dense<0.000000e+00> : vector<64x256xf32>
    %44 = tpu.matmul %43, %41, %cst_9 {dimension_numbers = #tpu.dot_dimension_numbers<[1], [0], [0], [1], [0, 0, 1, 1], [], []>} : vector<64x16xf32>, vector<16x256xf32>, vector<64x256xf32> -> vector<64x256xf32>
    %45 = vector.extract_strided_slice %44 {offsets = [0, 0], sizes = [16, 256], strides = [1, 1]} : vector<64x256xf32> to vector<16x256xf32>
    %46 = arith.mulf %45, %26 : vector<16x256xf32>
    %cst_10 = arith.constant dense<0.000000e+00> : vector<256xf32>
    %47 = vector.multi_reduction <add>, %46, %cst_10 [0] : vector<16x256xf32> to vector<256xf32>
    %48 = vector.shape_cast %47 : vector<256xf32> to vector<1x256xf32>
    %49 = vector.extract_strided_slice %44 {offsets = [16, 0], sizes = [16, 256], strides = [1, 1]} : vector<64x256xf32> to vector<16x256xf32>
    %50 = arith.mulf %49, %26 : vector<16x256xf32>
    %cst_11 = arith.constant dense<0.000000e+00> : vector<256xf32>
    %51 = vector.multi_reduction <add>, %50, %cst_11 [0] : vector<16x256xf32> to vector<256xf32>
    %52 = vector.shape_cast %51 : vector<256xf32> to vector<1x256xf32>
    %53 = vector.extract_strided_slice %44 {offsets = [32, 0], sizes = [16, 256], strides = [1, 1]} : vector<64x256xf32> to vector<16x256xf32>
    %54 = arith.mulf %53, %26 : vector<16x256xf32>
    %cst_12 = arith.constant dense<0.000000e+00> : vector<256xf32>
    %55 = vector.multi_reduction <add>, %54, %cst_12 [0] : vector<16x256xf32> to vector<256xf32>
    %56 = vector.shape_cast %55 : vector<256xf32> to vector<1x256xf32>
    %57 = vector.extract_strided_slice %44 {offsets = [48, 0], sizes = [16, 256], strides = [1, 1]} : vector<64x256xf32> to vector<16x256xf32>
    %58 = arith.mulf %57, %26 : vector<16x256xf32>
    %cst_13 = arith.constant dense<0.000000e+00> : vector<256xf32>
    %59 = vector.multi_reduction <add>, %58, %cst_13 [0] : vector<16x256xf32> to vector<256xf32>
    %60 = vector.shape_cast %59 : vector<256xf32> to vector<1x256xf32>
    %61 = tpu.concatenate %48, %52, %56, %60 in 0 : vector<1x256xf32>, vector<1x256xf32>, vector<1x256xf32>, vector<1x256xf32> -> vector<4x256xf32>
    %c0_14 = arith.constant 0 : index
    %c0_15 = arith.constant 0 : index
    %c0_16 = arith.constant 0 : index
    %62 = vector.load %arg4[%c0_14, %c0_15, %c0_16] : memref<1x4x256xf32, #tpu.memory_space<vmem>>, vector<1x4x256xf32>
    %63 = vector.shape_cast %62 : vector<1x4x256xf32> to vector<4x256xf32>
    %64 = vector.shape_cast %61 : vector<4x256xf32> to vector<1x4x256xf32>
    tpu.vector_store %arg4[%c0_14, %c0_15, %c0_16], %64 {strides = array<i32>} : memref<1x4x256xf32, #tpu.memory_space<vmem>>, vector<1x4x256xf32>,
    return
  }
  func.func @transform_0(%arg0: i32, %arg1: i32) -> (i32, i32, i32) {
    %c0_i32 = arith.constant 0 : i32
    %c0_i32_0 = arith.constant 0 : i32
    %c0_i32_1 = arith.constant 0 : i32
    return %arg0, %c0_i32, %c0_i32_0 : i32, i32, i32
  }
  func.func @transform_1(%arg0: i32, %arg1: i32) -> (i32, i32, i32) {
    %c0_i32 = arith.constant 0 : i32
    %c0_i32_0 = arith.constant 0 : i32
    return %arg0, %c0_i32, %arg1 : i32, i32, i32
  }
  func.func @transform_2(%arg0: i32, %arg1: i32) -> (i32, i32, i32) {
    %c0_i32 = arith.constant 0 : i32
    %c0_i32_0 = arith.constant 0 : i32
    return %arg0, %c0_i32, %arg1 : i32, i32, i32
  }
}

</mosaic_0001>

<bundles_post_ra>
// kernel: tpu_custom_call.1
= control target key start
LH: loop header
LB: loop body
LE: loop exit
PB: predicated region body
PF: predicated region fallthrough
CT: control target
= control target key end

     0   :  { %7 = vsyncpa [#allocation3], 0  ;;  %s1089_s0 = inlined_call_operand.vmem [shape: f32[2,64,16], index: 0, kind: input, shape index: {}]   ;;  %s1090_s1 = inlined_call_operand.vmem [shape: f32[2,2,256], index: 1, kind: input, shape index: {}]   ;;  %s1091_s2 = inlined_call_operand.hbm [shape: f32[2,4,256], index: 2, kind: output, shape index: {}]  }
   0x1   :  { %9 = vsyncpa [#allocation3 + $0x1], 0  ;;  %s896_s9 = smov 0   ;;  %s898_s10 = smov 0  }
   0x2   :  { %s900_s11 = smov 0   ;;  %s902_s12 = smov 0  }
   0x3   :  { %s904_s13 = smov 0   ;;  %s906_s14 = smov 0  }
   0x4 LB: > { %s709_s15 = sadd.s32 4294967295, %s877_s14   ;;  %s710_s16 = sadd.s32 4294967294, %s877_s14   ;;  %s877_s14 = sphi %s906_s14, %s15_s14   ;;  %s873_s13 = sphi %s904_s13, %s1098_s13   ;;  %s869_s12 = sphi %s902_s12, %s1097_s12   ;;  %s865_s11 = sphi %s900_s11, %s1096_s11   ;;  %s861_s10 = sphi %s898_s10, %s1095_s10   ;;  %s857_s9 = sphi %s896_s9, %s1094_s9  }
   0x5   : > { %s27_s17 = sadd.s32 1, %s873_s13  ;;  %s90_s18 = sadd.s32 1, %s865_s11 }
   0x6   : > { %p29_p0 = scmp.ge.s32.totalorder %s27_s17, 2  ;;  %p100_p1 = scmp.ne.s32.totalorder %s865_s11, %s861_s10 }
   0x7   : > { %p101_p2 = scmp.eq.s32.totalorder %s709_s15, 1  ;;  %p106_p3 = scmp.ne.s32.totalorder %s861_s10, %s857_s9 }
   0x8   : > { %s1100_s17 = smov (%p29_p0, %s27_s17), 0  ;;  %p107_p5 = scmp.eq.s32.totalorder %s710_s16, 1 }
   0x9   : > { %p936_p4 = por %p101_p2, %p100_p1  ;;  %s85_s20 = ssub.s32 %s873_s13, %s1100_s17 }
   0xa   : > { %p713_p6 = scmp.ge.s32.totalorder %s877_s14, 1  ;;  %p88_p7 = scmp.eq.s32.totalorder %s85_s20, 0 }
   0xb   : > { %p943_p8 = por %p107_p5, %p106_p3  ;;  %p146_p9 = scmp.lt.s32.totalorder %s877_s14, 3 }
   0xc   : > { %s949_s22 = scalar_select %p88_p7, %s865_s11, %s90_s18  }
   0xd   : > { %p147_p10 = pnand %p713_p6, %p146_p9 }
   0xe   : > { %p177_p11 = scmp.lt.s32.totalorder (!%p147_p10), %s869_s12, 1  ;;  %v197_v0 = vlaneseq (!%p147_p10)  ;;  %v879_v1 = vmov (!%p147_p10), 0.0   ;;  %vm380_vm8 = vcmask (!%p147_p10), 130048   ;;  %s174_s4 = sand.u32 (!%p147_p10), 1, %s861_s10  }
   0xf   : > { %150 = sbr.rel (%p147_p10) target bundleno = 308 (0x134), region = 28  ;;  %469 = vmatprep.mubr.f32.mxu0 (!%p147_p10), %v879_v1  ;;  %493 = vmatprep.mubr.f32.mxu1 (!%p147_p10), %v879_v1  ;;  %s1033_s5 = sshll.u32 (!%p147_p10), %s174_s4, 3 }
  0x10   : > { %v958_v2 = vshrl.u32 (!%p147_p10), %v197_v0, 7  ;;  %s734_s6 = sshll.u32 (!%p147_p10), %s869_s12, 7  ;;  %s176_s7 = scalar_lea.vmem (!%p147_p10), [#allocation2], %s1033_s5 }
  0x11   : > { %s621_s8 = sshll.u32 (!%p147_p10), %s176_s7, 4  ;;  %s1040_s18 = scalar_lea.hbm (!%p147_p10), %s1091_s2, %s734_s6  ;;  %s1042_s8 = int_to_ptr.vmem [resolvable:$true] %s621_s8 }
  0x12   : > { %v290_v5 = vsub.s32 (!%p147_p10), 1, %v958_v2  ;;  %v294_v6 = vsub.s32 (!%p147_p10), 3, %v958_v2  ;;  %v980_v16 = vadd.s32 (!%p147_p10), 8, %v958_v2  ;;  %v202_v47 = vsub.s32 (!%p147_p10), 0, %v958_v2  ;;  %s605_s20 = scalar_lea.sflag (!%p147_p10), [#allocation3], %s174_s4 }
  0x13   : > { %v206_v48 = vsub.s32 (!%p147_p10), 2, %v958_v2 }
  0x16   : > { %s955_s23 = scalar_select %p177_p11, %s869_s12, 1 }
  0x17   : > { %s799_s12 = scalar_lea.vmem %s1042_s8, 128 }
  0x18   : > { %s733_s24 = sshll.u32 %s955_s23, 2  ;;  %s732_s28 = sshll.u32 %s955_s23, 6 }
  0x19   : > { %s190_s27 = scalar_lea.vmem %s1090_s1, %s733_s24  ;;  %s181_s3 = scalar_lea.vmem %s1089_s0, %s732_s28 }
  0x1a   : > { %v193_v3 = vld [vmem:[%s190_s27] sm:$0xf]  ;;  %v373_v41 = vld [vmem:[%s181_s3 + $0x8] sm:$0xff]  ;;  %v374_v43 = vld [vmem:[%s181_s3 + $0x10] sm:$0xff]  ;;  %p800_p12 = scmp.ne.s32.totalorder %s1042_s8, %s799_s12  ;;  %s880_s23 = smov [#allocation2]  }
  0x1b   : > { %v194_v4 = vfloor.f32 %v193_v3  ;;  %v372_v39 = vld [vmem:[%s181_s3] sm:$0xff]  ;;  %v377_v42 = vld [vmem:[%s181_s3 + $0x28] sm:$0xff]  ;;  %v378_v44 = vld [vmem:[%s181_s3 + $0x30] sm:$0xff]  ;;  %s803_s24 = sshll.u32 %s880_s23, 4  ;;  %s804_s24 = int_to_ptr.vmem [resolvable:$false] %s803_s24 }
  0x1c   : > { %v376_v40 = vld [vmem:[%s181_s3 + $0x20] sm:$0xff]  ;;  %v375_v45 = vld [vmem:[%s181_s3 + $0x18] sm:$0xff]  ;;  %p801_p13 = pnand %p800_p12, %p936_p4  ;;  %s805_s25 = scalar_lea.vmem %s804_s24, 256 }
  0x1d   : > { %v965_v7 = vsub.f32 %v193_v3, %v194_v4  ;;  %v741_v8 = vtrunc.f32 %v194_v4  ;;  %v379_v46 = vld [vmem:[%s181_s3 + $0x38] sm:$0xff]  ;;  %p806_p1 = scmp.lt.s32.totalorder %s1042_s8, %s804_s24  ;;  %p807_p2 = scmp.lt.s32.totalorder %s805_s25, %s799_s12 }
  0x1e   : > { %p802_p0 = pneg %p801_p13 }
  0x1f   : > { %v967_v9 = vcvt.f32.s32 %v741_v8  ;;  %v970_v10 = vsub.f32 1.0, %v965_v7  ;;  %v335_v11 = vrot.slane %v965_v7, %v294_v6  ;;  %v331_v12 = vrot.slane %v965_v7, %v290_v5  ;;  %p808_p3 = por %p807_p2, %p806_p1 }
  0x20   : > { %v246_v52 = vrot.slane %v965_v7, %v202_v47  ;;  %v250_v55 = vrot.slane %v965_v7, %v206_v48 }
  0x21   : > { %v975_v13 = vadd.s32 1, %v967_v9  ;;  %v295_v14 = vrot.slane %v967_v9, %v294_v6  ;;  %v357_v15 = vrot.slane %v970_v10, %v294_v6  ;;  %v291_v17 = vrot.slane %v967_v9, %v290_v5  ;;  %p809_p5 = pnand %p808_p3, %p802_p0 }
  0x22   : > { %v353_v18 = vrot.slane %v970_v10, %v290_v5  ;;  %v345_v22 = vrot.slane %v335_v11, %v290_v5  ;;  %v341_v24 = vrot.slane %v331_v12, %v290_v5  ;;  %v203_v51 = vrot.slane %v967_v9, %v202_v47 }
  0x23   : > { %v303_v19 = vrot.slane %v295_v14, %v290_v5  ;;  %v315_v20 = vrot.slane %v975_v13, %v294_v6  ;;  %v311_v21 = vrot.slane %v975_v13, %v290_v5  ;;  %v299_v23 = vrot.slane %v291_v17, %v290_v5 }
  0x24   : > { %v367_v26 = vrot.slane %v357_v15, %v290_v5  ;;  %v363_v28 = vrot.slane %v353_v18, %v290_v5  ;;  %v225_v49 = vrot.slane %v975_v13, %v202_v47  ;;  %v229_v50 = vrot.slane %v975_v13, %v206_v48 }
  0x25   : > { %v323_v25 = vrot.slane %v315_v20, %v290_v5  ;;  %v319_v27 = vrot.slane %v311_v21, %v290_v5  ;;  %vm305_vm0 = vcmp.eq.s32.totalorder %v958_v2, %v303_v19  ;;  %vm307_vm1 = vcmp.eq.s32.totalorder %v980_v16, %v303_v19 }
  0x26   : > { %vm304_vm2 = vcmp.eq.s32.totalorder %v958_v2, %v299_v23  ;;  %vm306_vm3 = vcmp.eq.s32.totalorder %v980_v16, %v299_v23  ;;  %v233_v53 = vrot.slane %v225_v49, %v202_v47  ;;  %v207_v54 = vrot.slane %v967_v9, %v206_v48 }
  0x27   : > { %vm325_vm4 = vcmp.eq.s32.totalorder %v958_v2, %v323_v25  ;;  %vm327_vm5 = vcmp.eq.s32.totalorder %v980_v16, %v323_v25  ;;  %vm324_vm6 = vcmp.eq.s32.totalorder %v958_v2, %v319_v27  ;;  %vm326_vm7 = vcmp.eq.s32.totalorder %v980_v16, %v319_v27 }
  0x28   : > { %v347_v29 = vsel %vm325_vm4, %v345_v22, 0.0  ;;  %v349_v30 = vsel %vm327_vm5, %v345_v22, 0.0  ;;  %v346_v31 = vsel %vm324_vm6, %v341_v24, 0.0  ;;  %v348_v32 = vsel %vm326_vm7, %v341_v24, 0.0 }
  0x29   : > { %v369_v33 = vsel %vm305_vm0, %v367_v26, %v347_v29  ;;  %v371_v34 = vsel %vm307_vm1, %v367_v26, %v349_v30  ;;  %v368_v35 = vsel %vm304_vm2, %v363_v28, %v346_v31  ;;  %v370_v36 = vsel %vm306_vm3, %v363_v28, %v348_v32 }
  0x2a   : > { %v735_v37 = vpack.c.bf16 %v371_v34, %v369_v33  ;;  %v737_v38 = vpack.c.bf16 %v370_v36, %v368_v35  ;;  %v237_v56 = vrot.slane %v229_v50, %v202_v47  ;;  %v211_v57 = vrot.slane %v203_v51, %v202_v47 }
  0x2b   : > { %v269_v58 = vrot.slane %v970_v10, %v202_v47  ;;  %v256_v59 = vrot.slane %v246_v52, %v202_v47  ;;  %v273_v60 = vrot.slane %v970_v10, %v206_v48  ;;  %vm238_vm9 = vcmp.eq.s32.totalorder %v958_v2, %v233_v53 }
  0x2c   : > { %736 = vmatprep.subr.bf16.mxu0 %v735_v37  ;;  %739 = vmatprep.subr.bf16.mxu1 %v735_v37  ;;  %v215_v61 = vrot.slane %v207_v54, %v202_v47  ;;  %v260_v62 = vrot.slane %v250_v55, %v202_v47  ;;  %vm240_vm10 = vcmp.eq.s32.totalorder %v980_v16, %v233_v53  ;;  %vm590_vm1 = vcmask 1040384  }
  0x2d   : > { %738 = vmatpush1.bf16.msra.mxu0 %v737_v38  ;;  %740 = vmatpush1.bf16.msra.mxu1 %v737_v38  ;;  %vm239_vm11 = vcmp.eq.s32.totalorder %v958_v2, %v237_v56  ;;  %vm241_vm12 = vcmp.eq.s32.totalorder %v980_v16, %v237_v56  ;;  %vm216_vm13 = vcmp.eq.s32.totalorder %v958_v2, %v211_v57  ;;  %v261_v0 = vsel %vm238_vm9, %v256_v59, 0.0 }
  0x2e   : > { %v279_v63 = vrot.slane %v269_v58, %v202_v47  ;;  %vm218_vm14 = vcmp.eq.s32.totalorder %v980_v16, %v211_v57  ;;  %v263_v3 = vsel %vm240_vm10, %v256_v59, 0.0  ;;  %vm217_vm15 = vcmp.eq.s32.totalorder %v958_v2, %v215_v61 }
  0x2f   : > { %v262_v5 = vsel %vm239_vm11, %v260_v62, 0.0  ;;  %vm219_vm0 = vcmp.eq.s32.totalorder %v980_v16, %v215_v61  ;;  %v264_v7 = vsel %vm241_vm12, %v260_v62, 0.0  ;;  %vm593_vm2 = vcmask 1041408  }
  0x30   : > { %719 = vmatmul.mubr.msk.f32.vlgmr.msra.gmra.mrb[0].mxu0 %vm380_vm8, %v372_v39  ;;  %723 = vmatmul.mubr.msk.f32.vlgmr.msra.gmra.mrb[0].mxu1 %vm380_vm8, %v376_v40  ;;  %v284_v10 = vsel %vm216_vm13, %v279_v63, %v261_v0  ;;  %v286_v11 = vsel %vm218_vm14, %v279_v63, %v263_v3  ;;  %vm596_vm3 = vcmask 1042432  }
  0x31   : > { %475 = vmatprep.mubr.f32.mxu0 %v879_v1  ;;  %499 = vmatprep.mubr.f32.mxu1 %v879_v1 }
  0x34   : > { %720 = vmatmul.mubr.msk.f32.gmra.mrb[2].mxu0 %vm380_vm8, %v373_v41  ;;  %724 = vmatmul.mubr.msk.f32.gmra.mrb[2].mxu1 %vm380_vm8, %v377_v42 }
  0x35   : > { %481 = vmatprep.mubr.f32.mxu0 %v879_v1  ;;  %505 = vmatprep.mubr.f32.mxu1 %v879_v1 }
  0x38   : > { %721 = vmatmul.mubr.msk.f32.gmra.mrb[4].mxu0 %vm380_vm8, %v374_v43  ;;  %725 = vmatmul.mubr.msk.f32.gmra.mrb[4].mxu1 %vm380_vm8, %v378_v44 }
  0x39   : > { %487 = vmatprep.mubr.f32.mxu0 %v879_v1  ;;  %511 = vmatprep.mubr.f32.mxu1 %v879_v1  ;;  %v283_v1 = vrot.slane %v273_v60, %v202_v47 }
  0x3b   : > { %v285_v12 = vsel %vm217_vm15, %v283_v1, %v262_v5  ;;  %v287_v13 = vsel %vm219_vm0, %v283_v1, %v264_v7 }
  0x3c   : > { %722 = vmatmul.mubr.msk.f32.gmra.mrb[6].mxu0 %vm380_vm8, %v375_v45  ;;  %726 = vmatmul.mubr.msk.f32.gmra.mrb[6].mxu1 %vm380_vm8, %v379_v46 }
 0x103   : > { %v471_v4 = vpop.f32.mrb[0].mxu0  ;;  %v495_v6 = vpop.f32.mrb[0].mxu1 }
 0x104   : > { %v473_v8 = vpop.f32.mrb[1].mxu0  ;;  %v497_v9 = vpop.f32.mrb[1].mxu1  ;;  %v518_v17 = vmul.f32 %v471_v4, %v284_v10  ;;  %v554_v18 = vmul.f32 %v495_v6, %v284_v10 }
 0x105   : > { %v519_v2 = vmul.f32 %v473_v8, %v285_v12  ;;  %v555_v23 = vmul.f32 %v497_v9, %v285_v12 }
 0x107   : > { %v477_v14 = vpop.f32.mrb[2].mxu0  ;;  %v501_v15 = vpop.f32.mrb[2].mxu1 }
 0x108   : > { %v520_v19 = vmul.f32 %v477_v14, %v286_v11  ;;  %v556_v20 = vmul.f32 %v501_v15, %v286_v11  ;;  %v479_v21 = vpop.f32.mrb[3].mxu0  ;;  %v503_v22 = vpop.f32.mrb[3].mxu1 }
 0x109   : > { %v521_v24 = vmul.f32 %v479_v21, %v287_v13  ;;  %v557_v25 = vmul.f32 %v503_v22, %v287_v13 }
 0x10a   : > { %v522_v16 = vadd.f32 %v520_v19, %v518_v17  ;;  %v558_v26 = vadd.f32 %v556_v20, %v554_v18 }
 0x10b   : > { %v529_v27 = vadd.f32 %v521_v24, %v519_v2  ;;  %v565_v28 = vadd.f32 %v557_v25, %v555_v23  ;;  %v483_v29 = vpop.f32.mrb[4].mxu0  ;;  %v507_v30 = vpop.f32.mrb[4].mxu1 }
 0x10c   : > { %v523_v31 = vrot.slane %v522_v16, 4  ;;  %v559_v32 = vrot.slane %v558_v26, 4  ;;  %v485_v33 = vpop.f32.mrb[5].mxu0  ;;  %v509_v34 = vpop.f32.mrb[5].mxu1  ;;  %v536_v40 = vmul.f32 %v483_v29, %v284_v10  ;;  %v572_v44 = vmul.f32 %v507_v30, %v284_v10 }
 0x10d   : > { %v530_v35 = vrot.slane %v529_v27, 4  ;;  %v566_v36 = vrot.slane %v565_v28, 4  ;;  %v537_v49 = vmul.f32 %v485_v33, %v285_v12  ;;  %v573_v50 = vmul.f32 %v509_v34, %v285_v12 }
 0x10e   : > { %v524_v37 = vadd.f32 %v523_v31, %v522_v16  ;;  %v560_v38 = vadd.f32 %v559_v32, %v558_v26 }
 0x10f   : > { %v531_v39 = vadd.f32 %v530_v35, %v529_v27  ;;  %v489_v41 = vpop.f32.mrb[6].mxu0  ;;  %v513_v42 = vpop.f32.mrb[6].mxu1  ;;  %v567_v43 = vadd.f32 %v566_v36, %v565_v28 }
 0x110   : > { %v538_v45 = vmul.f32 %v489_v41, %v286_v11  ;;  %v574_v46 = vmul.f32 %v513_v42, %v286_v11  ;;  %v491_v47 = vpop.f32.mrb[7].mxu0  ;;  %v515_v48 = vpop.f32.mrb[7].mxu1  ;;  %v525_v53 = vrot.slane %v524_v37, 2  ;;  %v561_v56 = vrot.slane %v560_v38, 2 }
 0x111   : > { %v539_v51 = vmul.f32 %v491_v47, %v287_v13  ;;  %v575_v52 = vmul.f32 %v515_v48, %v287_v13  ;;  %v532_v57 = vrot.slane %v531_v39, 2  ;;  %v568_v60 = vrot.slane %v567_v43, 2 }
 0x112   : > { %v540_v54 = vadd.f32 %v538_v45, %v536_v40  ;;  %v576_v55 = vadd.f32 %v574_v46, %v572_v44  ;;  %v526_v1 = vadd.f32 %v525_v53, %v524_v37  ;;  %v562_v5 = vadd.f32 %v561_v56, %v560_v38 }
 0x113   : > { %v547_v58 = vadd.f32 %v539_v51, %v537_v49  ;;  %v583_v59 = vadd.f32 %v575_v52, %v573_v50  ;;  %v533_v6 = vadd.f32 %v532_v57, %v531_v39  ;;  %v569_v9 = vadd.f32 %v568_v60, %v567_v43 }
 0x114   : > { %v541_v61 = vrot.slane %v540_v54, 4  ;;  %v577_v62 = vrot.slane %v576_v55, 4  ;;  %v527_v14 = vrot.slane %v526_v1, 1  ;;  %v563_v18 = vrot.slane %v562_v5, 1 }
 0x115   : > { %v548_v63 = vrot.slane %v547_v58, 4  ;;  %v584_v0 = vrot.slane %v583_v59, 4  ;;  %v534_v19 = vrot.slane %v533_v6, 1  ;;  %v570_v22 = vrot.slane %v569_v9, 1 }
 0x116   : > { %v542_v3 = vadd.f32 %v541_v61, %v540_v54  ;;  %v578_v4 = vadd.f32 %v577_v62, %v576_v55  ;;  %v528_v16 = vadd.f32 %v527_v14, %v526_v1  ;;  %v564_v27 = vadd.f32 %v563_v18, %v562_v5 }
 0x117   : > { %v549_v7 = vadd.f32 %v548_v63, %v547_v58  ;;  %v585_v8 = vadd.f32 %v584_v0, %v583_v59  ;;  %v535_v28 = vadd.f32 %v534_v19, %v533_v6  ;;  %v571_v30 = vadd.f32 %v570_v22, %v569_v9 }
 0x118   : > { %v543_v10 = vrot.slane %v542_v3, 2  ;;  %v579_v11 = vrot.slane %v578_v4, 2 }
 0x119   : > { %v550_v12 = vrot.slane %v549_v7, 2  ;;  %v586_v13 = vrot.slane %v585_v8, 2 }
 0x11a   : > { %v544_v15 = vadd.f32 %v543_v10, %v542_v3  ;;  %v580_v17 = vadd.f32 %v579_v11, %v578_v4 }
 0x11b   : > { %v551_v20 = vadd.f32 %v550_v12, %v549_v7  ;;  %v587_v21 = vadd.f32 %v586_v13, %v585_v8 }
 0x11c   : > { %v545_v2 = vrot.slane %v544_v15, 1  ;;  %v581_v23 = vrot.slane %v580_v17, 1 }
 0x11d   : > { %v552_v24 = vrot.slane %v551_v20, 1  ;;  %v588_v25 = vrot.slane %v587_v21, 1 }
 0x11e   : > { %v546_v26 = vadd.f32 %v545_v2, %v544_v15  ;;  %v582_v31 = vadd.f32 %v581_v23, %v580_v17 }
 0x11f   : > { %v553_v29 = vadd.f32 %v552_v24, %v551_v20  ;;  %v589_v33 = vadd.f32 %v588_v25, %v587_v21 }
 0x120   : > { %v591_v32 = vsel %vm590_vm1, %v528_v16, %v546_v26 }
 0x121   : > { %v592_v34 = vsel %vm590_vm1, %v535_v28, %v553_v29  ;;  %v594_v35 = vsel %vm593_vm2, %v591_v32, %v564_v27 }
 0x122   : > { %v595_v36 = vsel %vm593_vm2, %v592_v34, %v571_v30  ;;  %v597_v37 = vsel %vm596_vm3, %v594_v35, %v582_v31 }
 0x123   : > { %v598_v38 = vsel %vm596_vm3, %v595_v36, %v589_v33 }
 0x124   : > { %v601_v39 = vcombine.low %v597_v37, %v598_v38 }
 0x126   : > { %603 = vst [vmem:[%s176_s7] sm:$0xff] %v601_v39 }
 0x127   : > { %812 = shalt.err (!%p809_p5)
}
 0x128   : > { %s813_s26 = scalar_lea.hbm %s1040_s18, 128  ;;  %s817_s29 = scalar_lea.hbm %s1091_s2, 256 }
 0x129   : > { %p814_p6 = scmp.ne.s32.totalorder %s1040_s18, %s813_s26  ;;  %p818_p10 = scmp.lt.u32.totalorder %s1040_s18, %s1091_s2 }
 0x12a   : > { %p819_p11 = scmp.lt.u32.totalorder %s817_s29, %s813_s26  ;;  %p821_p13 = scmp.lt.u32.totalorder %s813_s26, %s1040_s18 }
 0x12b   : > { %p815_p7 = pnand %p814_p6, %p936_p4 }
 0x12c   : > { %p820_p12 = por %p819_p11, %p818_p10 }
 0x12d   : > { %p816_p9 = pneg %p815_p7 }
 0x12e   : > { %p822_p0 = por %p821_p13, %p820_p12 }
 0x130   : > { %p823_p1 = pnand %p822_p0, %p816_p9 }
 0x132   : > { %826 = shalt.err (!%p823_p1)
}
 0x133   : > { %743 = dma.vmem_to_hbm [thread:$0]  (%p936_p4), %s1042_s8, 128, %s1040_s18, %s605_s20  }
 0x134 PF: > { %p749_p2 = scmp.ge.s32.totalorder %s877_s14, 2  ;;  %s633_s4 = sand.u32 1, %s857_s9  }
 0x135   : > { %s634_s5 = scalar_lea.sflag [#allocation3], %s633_s4 }
 0x136   : > { %p746_p3 = pnand %p749_p2, %p943_p8 }
 0x138   : > { %852 = dma.done.wait (!%p746_p3), %s634_s5, 128  }
 0x139   : > { %854 = vsyncadd (!%p746_p3), %s634_s5, 4294967168  ;;  %s15_s14 = sadd.s32 1, %s877_s14   ;;  %s1094_s9 = smov %s861_s10 }
 0x13a   : > { %p12_p5 = scmp.ge.s32.totalorder %s15_s14, 4   ;;  %s1095_s10 = smov %s865_s11 }
 0x13b   : > { %s1096_s11 = smov %s949_s22  ;;  %s1097_s12 = smov %s873_s13 }
 0x13c   : > { %s1098_s13 = smov %s1100_s17  ;;  %14 = sbr.rel (!%p12_p5) target bundleno = 4 (0x4), region = 66 }
 0x143   :  { %639 = vsyncpa [#allocation3], 1 }
 0x144   :  { %641 = vsyncpa [#allocation3 + $0x1], 1 }

</bundles_post_ra>
